<compile_context>
chip_gen: v6e
topology: v6e:2x2x1
jax: 0.10.0
libtpu: 0.0.40
codegen_flags: <defaults>
</compile_context>

<pallas_src>
import jax
import jax.numpy as jnp
from jax.experimental import pallas as pl
from jax.experimental.pallas import tpu as pltpu

_LN_EPS = 1e-5


# ---------------------------------------------------------------------------
# Fused Pallas kernel (one graph per grid step)
# ---------------------------------------------------------------------------

def _layer_norm(h, gamma, beta):
    """nn.LayerNorm over the feature axis, eps=1e-5 (centered vreg reused)."""
    mean = jnp.mean(h, axis=-1, keepdims=True)
    centered = h - mean
    var = jnp.mean(centered * centered, axis=-1, keepdims=True)
    return centered * jax.lax.rsqrt(var + _LN_EPS) * gamma + beta


def _gnn_fused_kernel(a_ref, x_ref, w0_ref, w1_ref, w2_ref,
                      small_ref, mpw_ref, mpb_ref, o_ref):
    """Whole GNNstack forward for one graph.

    a_ref  : [N, N]       bf16   normalized adjacency A_hat
    x_ref  : [N, Fin]     bf16   node features
    w*_ref : conv weights (bf16)
    small_ref : [8, H] f32 rows = b0, b1, b2, ln0_g, ln0_b, ln1_g, ln1_b, pad
    mpw_ref: [H, OUT_PAD] bf16   folded post_mp weight (W1 @ W2, padded)
    mpb_ref: [1, OUT_PAD] f32    folded post_mp bias   (b1 @ W2 + b2, padded)
    o_ref  : [N, OUT_PAD] f32    lane-dense output slab (sliced outside)
    """
    a = a_ref[...]                                    # bf16 [N, N]
    x = x_ref[...]                                    # bf16 [N, Fin]
    small = small_ref[...]                            # f32  [8, H]
    b0, b1, b2 = small[0:1, :], small[1:2, :], small[2:3, :]
    g0, be0 = small[3:4, :], small[4:5, :]
    g1, be1 = small[5:6, :], small[6:7, :]

    # ---- conv0 (Fin < Fout): aggregate first -> (A @ X) @ W0 + b0
    ax = jnp.dot(a, x, preferred_element_type=jnp.float32)
    h = jnp.dot(ax.astype(jnp.bfloat16), w0_ref[...],
                preferred_element_type=jnp.float32) + b0
    h = jnp.maximum(h, 0.0)                           # ReLU
    # F.dropout(p=0.25) -> identity in eval mode
    h = _layer_norm(h, g0, be0)

    # ---- conv1 (Fin == Fout): A @ (H @ W1) + b1
    hw = jnp.dot(h.astype(jnp.bfloat16), w1_ref[...],
                 preferred_element_type=jnp.float32)
    h = jnp.dot(a, hw.astype(jnp.bfloat16),
                preferred_element_type=jnp.float32) + b1
    h = jnp.maximum(h, 0.0)
    h = _layer_norm(h, g1, be1)

    # ---- conv2 (last layer: ReLU, no LayerNorm)
    hw = jnp.dot(h.astype(jnp.bfloat16), w2_ref[...],
                 preferred_element_type=jnp.float32)
    h = jnp.dot(a, hw.astype(jnp.bfloat16),
                preferred_element_type=jnp.float32) + b2
    h = jnp.maximum(h, 0.0)

    # ---- post_mp (folded single Linear) -> sigmoid (single EUP tanh, exact [0,1])
    y = jnp.dot(h.astype(jnp.bfloat16), mpw_ref[...],
                preferred_element_type=jnp.float32) + mpb_ref[...]
    o_ref[...] = (0.5 * (jnp.tanh(0.5 * y) + 1.0)).astype(o_ref.dtype)


# ---------------------------------------------------------------------------
# Wrapper
# ---------------------------------------------------------------------------

def _full_spec(shape):
    """Whole-array VMEM block, constant across the batch grid."""
    return pl.BlockSpec(shape, lambda *_: (0,) * len(shape))


def _vmem_limit_bytes(n, fin, out_pad, prepped):
    # Per-graph blocks are double-buffered by the pipeline.
    per_graph = 2 * (n * n * 2 + n * fin * 2 + n * out_pad * 4)
    weights = sum(int(v.size) * v.dtype.itemsize for v in prepped.values())
    needed = per_graph + weights + (8 << 20)          # compiler scratch headroom
    # Clamp: >= 32 MiB so we never under-provision, <= 48 MiB so we leave
    # headroom on v7x (64 MiB physical VMEM per TensorCore).
    return int(min(max(needed, 32 << 20), 48 << 20))


def gnnstack_forward(prepped, a_hat, x, *, output_dim):
    """task='node' forward (inference), batched over graphs.

    a_hat: [B, N, N] bf16 precomputed normalized adjacency.
    x    : [B, N, Fin] bf16 node features.
    """
    b, n, _ = a_hat.shape
    fin = x.shape[-1]
    out_pad = prepped["mp_w"].shape[1]

    out = pl.pallas_call(
        _gnn_fused_kernel,
        out_shape=jax.ShapeDtypeStruct((b, n, out_pad), jnp.float32),
        grid_spec=pltpu.PrefetchScalarGridSpec(
            num_scalar_prefetch=0,
            grid=(b,),
            in_specs=[
                pl.BlockSpec((None, n, n), lambda i: (i, 0, 0)),      # a_hat
                pl.BlockSpec((None, n, fin), lambda i: (i, 0, 0)),    # x
                _full_spec(prepped["w0"].shape),
                _full_spec(prepped["w1"].shape),
                _full_spec(prepped["w2"].shape),
                _full_spec(prepped["small"].shape),
                _full_spec(prepped["mp_w"].shape),
                _full_spec(prepped["mp_b"].shape),
            ],
            out_specs=pl.BlockSpec((None, n, out_pad), lambda i: (i, 0, 0)),
        ),
        compiler_params=pltpu.CompilerParams(
            dimension_semantics=("parallel",),
            vmem_limit_bytes=_vmem_limit_bytes(n, fin, out_pad, prepped),
        ),
    )(a_hat, x,
      prepped["w0"], prepped["w1"], prepped["w2"],
      prepped["small"], prepped["mp_w"], prepped["mp_b"])

    return out[..., :output_dim]


# ---------------------------------------------------------------------------
# One-time parameter prep (outside jit): fold post_mp, pad, cast, pack
# ---------------------------------------------------------------------------

def prepare_params(p):
    h = p["conv0_w"].shape[1]
    output_dim = p["mp_w2"].shape[1]
    out_pad = ((output_dim + 127) // 128) * 128

    # Fold post_mp: Linear -> Dropout(identity in eval) -> Linear, with NO
    # activation in between, so (x W1 + b1) W2 + b2 == x (W1 W2) + (b1 W2 + b2).
    mp_w = p["mp_w1"] @ p["mp_w2"]                    # [H, OUT] f32 (exact fold)
    mp_b = p["mp_b1"] @ p["mp_w2"] + p["mp_b2"]       # [1, OUT] f32
    mp_w = jnp.pad(mp_w, ((0, 0), (0, out_pad - output_dim)))
    mp_b = jnp.pad(mp_b, ((0, 0), (0, out_pad - output_dim)))

    # Pack all tiny (1, H) params into one [8, H] array (one DMA instead of 7+).
    small = jnp.concatenate([
        p["conv0_b"], p["conv1_b"], p["conv2_b"],
        p["ln0_gamma"], p["ln0_beta"], p["ln1_gamma"], p["ln1_beta"],
        jnp.zeros((1, h), jnp.float32),
    ], axis=0).astype(jnp.float32)

    return {
        "w0": p["conv0_w"].astype(jnp.bfloat16),
        "w1": p["conv1_w"].astype(jnp.bfloat16),
        "w2": p["conv2_w"].astype(jnp.bfloat16),
        "small": small,
        "mp_w": mp_w.astype(jnp.bfloat16),
        "mp_b": mp_b,
    }


# ---------------------------------------------------------------------------
# Glue: normalized adjacency (built once per graph, outside jit) + params
# ---------------------------------------------------------------------------

def build_normalized_adjacency(edge_index, num_nodes):
    """A_hat = D^-1/2 (A + I) D^-1/2 from edge_index [2, E], returned as bf16.

    Adjacency is binarized and self loops are added via max with I so an
    existing (i, i) edge is not double counted.
    """
    src, dst = edge_index[0], edge_index[1]
    adj = jnp.zeros((num_nodes, num_nodes), jnp.float32)
    adj = adj.at[src, dst].set(1.0)
    adj = adj.at[dst, src].set(1.0)                                   # symmetrize
    adj = jnp.maximum(adj, jnp.eye(num_nodes, dtype=jnp.float32))     # self loops
    deg = jnp.sum(adj, axis=1)
    d_inv_sqrt = jnp.where(deg > 0, 1.0 / jnp.sqrt(deg), 0.0)
    a_hat = adj * d_inv_sqrt[:, None] * d_inv_sqrt[None, :]
    return a_hat.astype(jnp.bfloat16)


def init_params(key, input_dim, hidden_dim, output_dim):
    ks = jax.random.split(key, 8)

    def glorot(k, fan_in, fan_out):
        scale = jnp.sqrt(6.0 / (fan_in + fan_out))
        return jax.random.uniform(k, (fan_in, fan_out), jnp.float32, -scale, scale)

    params = {}
    dims = [(input_dim, hidden_dim), (hidden_dim, hidden_dim), (hidden_dim, hidden_dim)]
    for i, (fi, fo) in enumerate(dims):
        params[f"conv{i}_w"] = glorot(ks[i], fi, fo)
        params[f"conv{i}_b"] = jnp.zeros((1, fo), jnp.float32)
    for i in range(2):
        params[f"ln{i}_gamma"] = jnp.ones((1, hidden_dim), jnp.float32)
        params[f"ln{i}_beta"] = jnp.zeros((1, hidden_dim), jnp.float32)
    params["mp_w1"] = glorot(ks[3], hidden_dim, hidden_dim)
    params["mp_b1"] = jnp.zeros((1, hidden_dim), jnp.float32)
    params["mp_w2"] = glorot(ks[4], hidden_dim, output_dim)
    params["mp_b2"] = jnp.zeros((1, output_dim), jnp.float32)
    return params


# ---------------------------------------------------------------------------
# Main
# ---------------------------------------------------------------------------

if __name__ == "__main__":
    BATCH = 2
    NUM_NODES = 64
    NUM_EDGES = 128
    INPUT_DIM = 16
    HIDDEN_DIM = 32
    OUTPUT_DIM = 8

    key = jax.random.PRNGKey(0)
    k_x, k_e, k_p = jax.random.split(key, 3)

    x = jax.random.normal(k_x, (BATCH, NUM_NODES, INPUT_DIM), jnp.float32)
    edge_index = jax.random.randint(k_e, (BATCH, 2, NUM_EDGES), 0, NUM_NODES, jnp.int32)
    raw_params = init_params(k_p, INPUT_DIM, HIDDEN_DIM, OUTPUT_DIM)

    # Static graphs / weights -> built / prepped ONCE, outside the jitted forward.
    a_hat = jax.vmap(lambda e: build_normalized_adjacency(e, NUM_NODES))(edge_index)
    a_hat = jax.block_until_ready(a_hat)
    prepped = prepare_params(raw_params)
    x_bf16 = x.astype(jnp.bfloat16)

    fwd = jax.jit(gnnstack_forward, static_argnames="output_dim")
    out = jax.block_until_ready(fwd(prepped, a_hat, x_bf16, output_dim=OUTPUT_DIM))

    assert out.shape == (BATCH, NUM_NODES, OUTPUT_DIM), out.shape
    assert bool(jnp.all(jnp.isfinite(out)))
    assert bool(jnp.all((out >= 0.0) & (out <= 1.0)))  # sigmoid output range
    print("KERNEL_OK")
</pallas_src>

<mosaic_0001>
module attributes {stable_mosaic.version = 11 : i64} {
  func.func @_gnn_fused_kernel(%arg0: i32, %arg1: memref<1x64x64xbf16, #tpu.memory_space<vmem>>, %arg2: memref<1x64x16xbf16, #tpu.memory_space<vmem>>, %arg3: memref<16x32xbf16, #tpu.memory_space<vmem>>, %arg4: memref<32x32xbf16, #tpu.memory_space<vmem>>, %arg5: memref<32x32xbf16, #tpu.memory_space<vmem>>, %arg6: memref<8x32xf32, #tpu.memory_space<vmem>>, %arg7: memref<32x128xbf16, #tpu.memory_space<vmem>>, %arg8: memref<1x128xf32, #tpu.memory_space<vmem>>, %arg9: memref<1x64x128xf32, #tpu.memory_space<vmem>>) attributes {dimension_semantics = [#tpu.dimension_semantics<parallel>], iteration_bounds = array<i64: 2>, scalar_prefetch = 0 : i64, scratch_operands = 0 : i64, tpu.core_type = #tpu.core_type<tc>, window_params = [{transform_indices = @transform_0, window_bounds = array<i64: 1, 64, 64>}, {transform_indices = @transform_1, window_bounds = array<i64: 1, 64, 16>}, {pipeline_mode = #tpu.pipeline_mode<synchronous>, transform_indices = @transform_2, window_bounds = array<i64: 16, 32>}, {pipeline_mode = #tpu.pipeline_mode<synchronous>, transform_indices = @transform_3, window_bounds = array<i64: 32, 32>}, {pipeline_mode = #tpu.pipeline_mode<synchronous>, transform_indices = @transform_4, window_bounds = array<i64: 32, 32>}, {pipeline_mode = #tpu.pipeline_mode<synchronous>, transform_indices = @transform_5, window_bounds = array<i64: 8, 32>}, {pipeline_mode = #tpu.pipeline_mode<synchronous>, transform_indices = @transform_6, window_bounds = array<i64: 32, 128>}, {pipeline_mode = #tpu.pipeline_mode<synchronous>, transform_indices = @transform_7, window_bounds = array<i64: 1, 128>}, {transform_indices = @transform_8, window_bounds = array<i64: 1, 64, 128>}]} {
    %c0 = arith.constant 0 : index
    %c0_0 = arith.constant 0 : index
    %c0_1 = arith.constant 0 : index
    %0 = vector.load %arg1[%c0, %c0_0, %c0_1] : memref<1x64x64xbf16, #tpu.memory_space<vmem>>, vector<1x64x64xbf16>
    %1 = vector.shape_cast %0 : vector<1x64x64xbf16> to vector<64x64xbf16>
    %c0_2 = arith.constant 0 : index
    %c0_3 = arith.constant 0 : index
    %c0_4 = arith.constant 0 : index
    %2 = vector.load %arg2[%c0_2, %c0_3, %c0_4] : memref<1x64x16xbf16, #tpu.memory_space<vmem>>, vector<1x64x16xbf16>
    %3 = vector.shape_cast %2 : vector<1x64x16xbf16> to vector<64x16xbf16>
    %c0_5 = arith.constant 0 : index
    %c0_6 = arith.constant 0 : index
    %4 = vector.load %arg6[%c0_5, %c0_6] : memref<8x32xf32, #tpu.memory_space<vmem>>, vector<8x32xf32>
    %5 = vector.extract_strided_slice %4 {offsets = [0, 0], sizes = [1, 32], strides = [1, 1]} : vector<8x32xf32> to vector<1x32xf32>
    %6 = vector.extract_strided_slice %4 {offsets = [1, 0], sizes = [1, 32], strides = [1, 1]} : vector<8x32xf32> to vector<1x32xf32>
    %7 = vector.extract_strided_slice %4 {offsets = [2, 0], sizes = [1, 32], strides = [1, 1]} : vector<8x32xf32> to vector<1x32xf32>
    %8 = vector.extract_strided_slice %4 {offsets = [3, 0], sizes = [1, 32], strides = [1, 1]} : vector<8x32xf32> to vector<1x32xf32>
    %9 = vector.extract_strided_slice %4 {offsets = [4, 0], sizes = [1, 32], strides = [1, 1]} : vector<8x32xf32> to vector<1x32xf32>
    %10 = vector.extract_strided_slice %4 {offsets = [5, 0], sizes = [1, 32], strides = [1, 1]} : vector<8x32xf32> to vector<1x32xf32>
    %11 = vector.extract_strided_slice %4 {offsets = [6, 0], sizes = [1, 32], strides = [1, 1]} : vector<8x32xf32> to vector<1x32xf32>
    %cst = arith.constant dense<0.000000e+00> : vector<64x16xf32>
    %12 = tpu.matmul %1, %3, %cst {dimension_numbers = #tpu.dot_dimension_numbers<[1], [0], [0], [1], [0, 0, 1, 1], [], []>} : vector<64x64xbf16>, vector<64x16xbf16>, vector<64x16xf32> -> vector<64x16xf32>
    %13 = arith.truncf %12 : vector<64x16xf32> to vector<64x16xbf16>
    %c0_7 = arith.constant 0 : index
    %c0_8 = arith.constant 0 : index
    %14 = vector.load %arg3[%c0_7, %c0_8] : memref<16x32xbf16, #tpu.memory_space<vmem>>, vector<16x32xbf16>
    %cst_9 = arith.constant dense<0.000000e+00> : vector<64x32xf32>
    %15 = tpu.matmul %13, %14, %cst_9 {dimension_numbers = #tpu.dot_dimension_numbers<[1], [0], [0], [1], [0, 0, 1, 1], [], []>} : vector<64x16xbf16>, vector<16x32xbf16>, vector<64x32xf32> -> vector<64x32xf32>
    %16 = vector.broadcast %5 : vector<1x32xf32> to vector<64x32xf32>
    %17 = arith.addf %15, %16 : vector<64x32xf32>
    %cst_10 = arith.constant 0.000000e+00 : f32
    %18 = vector.broadcast %cst_10 : f32 to vector<64x32xf32>
    %19 = arith.maximumf %17, %18 : vector<64x32xf32>
    %cst_11 = arith.constant dense<0.000000e+00> : vector<64xf32>
    %20 = vector.multi_reduction <add>, %19, %cst_11 [1] : vector<64x32xf32> to vector<64xf32>
    %21 = vector.shape_cast %20 : vector<64xf32> to vector<64x1xf32>
    %cst_12 = arith.constant 3.200000e+01 : f32
    %22 = vector.broadcast %cst_12 : f32 to vector<64x1xf32>
    %23 = arith.divf %21, %22 : vector<64x1xf32>
    %24 = vector.broadcast %23 : vector<64x1xf32> to vector<64x32xf32>
    %25 = arith.subf %19, %24 : vector<64x32xf32>
    %26 = arith.mulf %25, %25 : vector<64x32xf32>
    %cst_13 = arith.constant dense<0.000000e+00> : vector<64xf32>
    %27 = vector.multi_reduction <add>, %26, %cst_13 [1] : vector<64x32xf32> to vector<64xf32>
    %28 = vector.shape_cast %27 : vector<64xf32> to vector<64x1xf32>
    %cst_14 = arith.constant 3.200000e+01 : f32
    %29 = vector.broadcast %cst_14 : f32 to vector<64x1xf32>
    %30 = arith.divf %28, %29 : vector<64x1xf32>
    %cst_15 = arith.constant 9.99999974E-6 : f32
    %31 = vector.broadcast %cst_15 : f32 to vector<64x1xf32>
    %32 = arith.addf %30, %31 : vector<64x1xf32>
    %33 = math.rsqrt %32 : vector<64x1xf32>
    %34 = vector.broadcast %33 : vector<64x1xf32> to vector<64x32xf32>
    %35 = arith.mulf %25, %34 : vector<64x32xf32>
    %36 = vector.broadcast %8 : vector<1x32xf32> to vector<64x32xf32>
    %37 = arith.mulf %35, %36 : vector<64x32xf32>
    %38 = vector.broadcast %9 : vector<1x32xf32> to vector<64x32xf32>
    %39 = arith.addf %37, %38 : vector<64x32xf32>
    %40 = arith.truncf %39 : vector<64x32xf32> to vector<64x32xbf16>
    %c0_16 = arith.constant 0 : index
    %c0_17 = arith.constant 0 : index
    %41 = vector.load %arg4[%c0_16, %c0_17] : memref<32x32xbf16, #tpu.memory_space<vmem>>, vector<32x32xbf16>
    %cst_18 = arith.constant dense<0.000000e+00> : vector<64x32xf32>
    %42 = tpu.matmul %40, %41, %cst_18 {dimension_numbers = #tpu.dot_dimension_numbers<[1], [0], [0], [1], [0, 0, 1, 1], [], []>} : vector<64x32xbf16>, vector<32x32xbf16>, vector<64x32xf32> -> vector<64x32xf32>
    %43 = arith.truncf %42 : vector<64x32xf32> to vector<64x32xbf16>
    %cst_19 = arith.constant dense<0.000000e+00> : vector<64x32xf32>
    %44 = tpu.matmul %1, %43, %cst_19 {dimension_numbers = #tpu.dot_dimension_numbers<[1], [0], [0], [1], [0, 0, 1, 1], [], []>} : vector<64x64xbf16>, vector<64x32xbf16>, vector<64x32xf32> -> vector<64x32xf32>
    %45 = vector.broadcast %6 : vector<1x32xf32> to vector<64x32xf32>
    %46 = arith.addf %44, %45 : vector<64x32xf32>
    %cst_20 = arith.constant 0.000000e+00 : f32
    %47 = vector.broadcast %cst_20 : f32 to vector<64x32xf32>
    %48 = arith.maximumf %46, %47 : vector<64x32xf32>
    %cst_21 = arith.constant dense<0.000000e+00> : vector<64xf32>
    %49 = vector.multi_reduction <add>, %48, %cst_21 [1] : vector<64x32xf32> to vector<64xf32>
    %50 = vector.shape_cast %49 : vector<64xf32> to vector<64x1xf32>
    %cst_22 = arith.constant 3.200000e+01 : f32
    %51 = vector.broadcast %cst_22 : f32 to vector<64x1xf32>
    %52 = arith.divf %50, %51 : vector<64x1xf32>
    %53 = vector.broadcast %52 : vector<64x1xf32> to vector<64x32xf32>
    %54 = arith.subf %48, %53 : vector<64x32xf32>
    %55 = arith.mulf %54, %54 : vector<64x32xf32>
    %cst_23 = arith.constant dense<0.000000e+00> : vector<64xf32>
    %56 = vector.multi_reduction <add>, %55, %cst_23 [1] : vector<64x32xf32> to vector<64xf32>
    %57 = vector.shape_cast %56 : vector<64xf32> to vector<64x1xf32>
    %cst_24 = arith.constant 3.200000e+01 : f32
    %58 = vector.broadcast %cst_24 : f32 to vector<64x1xf32>
    %59 = arith.divf %57, %58 : vector<64x1xf32>
    %cst_25 = arith.constant 9.99999974E-6 : f32
    %60 = vector.broadcast %cst_25 : f32 to vector<64x1xf32>
    %61 = arith.addf %59, %60 : vector<64x1xf32>
    %62 = math.rsqrt %61 : vector<64x1xf32>
    %63 = vector.broadcast %62 : vector<64x1xf32> to vector<64x32xf32>
    %64 = arith.mulf %54, %63 : vector<64x32xf32>
    %65 = vector.broadcast %10 : vector<1x32xf32> to vector<64x32xf32>
    %66 = arith.mulf %64, %65 : vector<64x32xf32>
    %67 = vector.broadcast %11 : vector<1x32xf32> to vector<64x32xf32>
    %68 = arith.addf %66, %67 : vector<64x32xf32>
    %69 = arith.truncf %68 : vector<64x32xf32> to vector<64x32xbf16>
    %c0_26 = arith.constant 0 : index
    %c0_27 = arith.constant 0 : index
    %70 = vector.load %arg5[%c0_26, %c0_27] : memref<32x32xbf16, #tpu.memory_space<vmem>>, vector<32x32xbf16>
    %cst_28 = arith.constant dense<0.000000e+00> : vector<64x32xf32>
    %71 = tpu.matmul %69, %70, %cst_28 {dimension_numbers = #tpu.dot_dimension_numbers<[1], [0], [0], [1], [0, 0, 1, 1], [], []>} : vector<64x32xbf16>, vector<32x32xbf16>, vector<64x32xf32> -> vector<64x32xf32>
    %72 = arith.truncf %71 : vector<64x32xf32> to vector<64x32xbf16>
    %cst_29 = arith.constant dense<0.000000e+00> : vector<64x32xf32>
    %73 = tpu.matmul %1, %72, %cst_29 {dimension_numbers = #tpu.dot_dimension_numbers<[1], [0], [0], [1], [0, 0, 1, 1], [], []>} : vector<64x64xbf16>, vector<64x32xbf16>, vector<64x32xf32> -> vector<64x32xf32>
    %74 = vector.broadcast %7 : vector<1x32xf32> to vector<64x32xf32>
    %75 = arith.addf %73, %74 : vector<64x32xf32>
    %cst_30 = arith.constant 0.000000e+00 : f32
    %76 = vector.broadcast %cst_30 : f32 to vector<64x32xf32>
    %77 = arith.maximumf %75, %76 : vector<64x32xf32>
    %78 = arith.truncf %77 : vector<64x32xf32> to vector<64x32xbf16>
    %c0_31 = arith.constant 0 : index
    %c0_32 = arith.constant 0 : index
    %79 = vector.load %arg7[%c0_31, %c0_32] : memref<32x128xbf16, #tpu.memory_space<vmem>>, vector<32x128xbf16>
    %cst_33 = arith.constant dense<0.000000e+00> : vector<64x128xf32>
    %80 = tpu.matmul %78, %79, %cst_33 {dimension_numbers = #tpu.dot_dimension_numbers<[1], [0], [0], [1], [0, 0, 1, 1], [], []>} : vector<64x32xbf16>, vector<32x128xbf16>, vector<64x128xf32> -> vector<64x128xf32>
    %c0_34 = arith.constant 0 : index
    %c0_35 = arith.constant 0 : index
    %81 = vector.load %arg8[%c0_34, %c0_35] : memref<1x128xf32, #tpu.memory_space<vmem>>, vector<1x128xf32>
    %82 = vector.broadcast %81 : vector<1x128xf32> to vector<64x128xf32>
    %83 = arith.addf %80, %82 : vector<64x128xf32>
    %cst_36 = arith.constant 5.000000e-01 : f32
    %84 = vector.broadcast %cst_36 : f32 to vector<64x128xf32>
    %85 = arith.mulf %84, %83 : vector<64x128xf32>
    %86 = math.tanh %85 : vector<64x128xf32>
    %cst_37 = arith.constant 1.000000e+00 : f32
    %87 = vector.broadcast %cst_37 : f32 to vector<64x128xf32>
    %88 = arith.addf %86, %87 : vector<64x128xf32>
    %cst_38 = arith.constant 5.000000e-01 : f32
    %89 = vector.broadcast %cst_38 : f32 to vector<64x128xf32>
    %90 = arith.mulf %89, %88 : vector<64x128xf32>
    %c0_39 = arith.constant 0 : index
    %c0_40 = arith.constant 0 : index
    %c0_41 = arith.constant 0 : index
    %91 = vector.load %arg9[%c0_39, %c0_40, %c0_41] : memref<1x64x128xf32, #tpu.memory_space<vmem>>, vector<1x64x128xf32>
    %92 = vector.shape_cast %91 : vector<1x64x128xf32> to vector<64x128xf32>
    %93 = vector.shape_cast %90 : vector<64x128xf32> to vector<1x64x128xf32>
    tpu.vector_store %arg9[%c0_39, %c0_40, %c0_41], %93 {strides = array<i32>} : memref<1x64x128xf32, #tpu.memory_space<vmem>>, vector<1x64x128xf32>,
    return
  }
  func.func @transform_0(%arg0: i32) -> (i32, i32, i32) {
    %c0_i32 = arith.constant 0 : i32
    %c0_i32_0 = arith.constant 0 : i32
    %c0_i32_1 = arith.constant 0 : i32
    return %arg0, %c0_i32, %c0_i32_0 : i32, i32, i32
  }
  func.func @transform_1(%arg0: i32) -> (i32, i32, i32) {
    %c0_i32 = arith.constant 0 : i32
    %c0_i32_0 = arith.constant 0 : i32
    %c0_i32_1 = arith.constant 0 : i32
    return %arg0, %c0_i32, %c0_i32_0 : i32, i32, i32
  }
  func.func @transform_2(%arg0: i32) -> (i32, i32) {
    %c0_i32 = arith.constant 0 : i32
    %c0_i32_0 = arith.constant 0 : i32
    %c0_i32_1 = arith.constant 0 : i32
    return %c0_i32, %c0_i32_0 : i32, i32
  }
  func.func @transform_3(%arg0: i32) -> (i32, i32) {
    %c0_i32 = arith.constant 0 : i32
    %c0_i32_0 = arith.constant 0 : i32
    %c0_i32_1 = arith.constant 0 : i32
    return %c0_i32, %c0_i32_0 : i32, i32
  }
  func.func @transform_4(%arg0: i32) -> (i32, i32) {
    %c0_i32 = arith.constant 0 : i32
    %c0_i32_0 = arith.constant 0 : i32
    %c0_i32_1 = arith.constant 0 : i32
    return %c0_i32, %c0_i32_0 : i32, i32
  }
  func.func @transform_5(%arg0: i32) -> (i32, i32) {
    %c0_i32 = arith.constant 0 : i32
    %c0_i32_0 = arith.constant 0 : i32
    %c0_i32_1 = arith.constant 0 : i32
    return %c0_i32, %c0_i32_0 : i32, i32
  }
  func.func @transform_6(%arg0: i32) -> (i32, i32) {
    %c0_i32 = arith.constant 0 : i32
    %c0_i32_0 = arith.constant 0 : i32
    %c0_i32_1 = arith.constant 0 : i32
    return %c0_i32, %c0_i32_0 : i32, i32
  }
  func.func @transform_7(%arg0: i32) -> (i32, i32) {
    %c0_i32 = arith.constant 0 : i32
    %c0_i32_0 = arith.constant 0 : i32
    %c0_i32_1 = arith.constant 0 : i32
    return %c0_i32, %c0_i32_0 : i32, i32
  }
  func.func @transform_8(%arg0: i32) -> (i32, i32, i32) {
    %c0_i32 = arith.constant 0 : i32
    %c0_i32_0 = arith.constant 0 : i32
    %c0_i32_1 = arith.constant 0 : i32
    return %arg0, %c0_i32, %c0_i32_0 : i32, i32, i32
  }
}

</mosaic_0001>

<bundles_post_ra>
// kernel: gnnstack_forward.1
= control target key start
LH: loop header
LB: loop body
LE: loop exit
PB: predicated region body
PF: predicated region fallthrough
CT: control target
= control target key end

     0   :  { %13 = vsyncpa [#allocation3], 0  ;;  %s2191_s0 = inlined_call_operand.vmem [shape: bf16[2,64,64], index: 0, kind: input, shape index: {}]   ;;  %s2192_s1 = inlined_call_operand.vmem [shape: bf16[2,64,16], index: 1, kind: input, shape index: {}]   ;;  %s2193_s2 = inlined_call_operand.vmem [shape: bf16[16,32], index: 2, kind: input, shape index: {}]   ;;  %s2194_s3 = inlined_call_operand.vmem [shape: bf16[32,32], index: 3, kind: input, shape index: {}]   ;;  %s2195_s4 = inlined_call_operand.hbm [shape: bf16[32,32], index: 4, kind: input, shape index: {}]   ;;  %s2196_s5 = inlined_call_operand.hbm [shape: f32[8,32], index: 5, kind: input, shape index: {}]   ;;  %s2197_s6 = inlined_call_operand.hbm [shape: bf16[32,128], index: 6, kind: input, shape index: {}]   ;;  %s2198_s7 = inlined_call_operand.vmem [shape: f32[1,128], index: 7, kind: input, shape index: {}]   ;;  %s2199_s8 = inlined_call_operand.vmem [shape: f32[2,64,128], index: 8, kind: output, shape index: {}]  }
   0x1   :  { %14 = vsyncpa [#allocation5], 0  ;;  %s1921_s27 = smov 0  }
   0x2 LB: > { %s1871_s28 = smov [#allocation4]   ;;  %s1927_s30 = sadd.s32 4294967295, %s1869_s27   ;;  %s1869_s27 = sphi %s1921_s27, %s20_s27  }
   0x3   : > { %s261_s29 = sshll.u32 %s1871_s28, 4  ;;  %p1468_p0 = scmp.ge.s32.totalorder %s1869_s27, 1  ;;  %s262_s29 = int_to_ptr.vmem [resolvable:$true] %s261_s29 }
   0x4   : > { %p229_p1 = scmp.lt.s32.totalorder %s1869_s27, 3  ;;  %p2200_p2 = scmp.eq.s32.totalorder %s1927_s30, 0 }
   0x5   : > { %s1872_s10 = smov [#allocation2]   ;;  %s1873_s13 = smov [#allocation6]  }
   0x6   : > { %p1932_p3 = pnand %p1468_p0, %p229_p1  ;;  %s247_s11 = sshll.u32 %s1872_s10, 4  ;;  %s248_s11 = int_to_ptr.vmem [resolvable:$true] %s247_s11 }
   0x7   : > { %s271_s14 = sshll.u32 %s1873_s13, 4  ;;  %s1788_s15 = scalar_lea.vmem %s262_s29, 128  ;;  %s1944_s14 = int_to_ptr.vmem [resolvable:$true] %s271_s14 }
   0x8   : > { %s2202_s9 = scalar_select %p1932_p3, 1, 0 }
   0x9   : > { %p1685_p4 = pneg %p1932_p3  ;;  %p1789_p7 = scmp.ne.s32.totalorder %s262_s29, %s1788_s15 }
   0xa   : > { %p1796_p10 = scmp.lt.s32.totalorder %s262_s29, %s262_s29  ;;  %p1797_p11 = scmp.lt.s32.totalorder %s1788_s15, %s1788_s15 }
   0xb   : > { %p1940_p5 = pnand %p2200_p2, %p1685_p4 }
   0xc   : > { %p1798_p12 = por %p1797_p11, %p1796_p10 }
   0xd   : > { %p1779_p6 = pneg %p1940_p5 }
   0xf   : > { %p1791_p8 = pnand %p1789_p7, %p1779_p6 }
  0x11   : > { %p1792_p9 = pneg %p1791_p8 }
  0x13   : > { %p1799_p13 = pnand %p1798_p12, %p1792_p9 }
  0x15   : > { %1802 = shalt.err (!%p1799_p13)
}
  0x16   : > { %1691 = dma.hbm_to_vmem [thread:$0]  (!%p1940_p5), %s2196_s5, 128, %s262_s29, [#allocation5]  }
  0x17   : > { %s1814_s18 = scalar_lea.vmem %s248_s11, 256  ;;  %p1822_p7 = scmp.lt.s32.totalorder %s248_s11, %s248_s11 }
  0x18   : > { %p1815_p0 = scmp.ne.s32.totalorder %s248_s11, %s1814_s18  ;;  %p1823_p8 = scmp.lt.s32.totalorder %s1814_s18, %s1814_s18 }
  0x1a   : > { %p1817_p1 = pnand %p1815_p0, %p1779_p6  ;;  %p1824_p2 = por %p1823_p8, %p1822_p7 }
  0x1c   : > { %p1818_p4 = pneg %p1817_p1 }
  0x1e   : > { %p1825_p3 = pnand %p1824_p2, %p1818_p4 }
  0x20   : > { %1828 = shalt.err (!%p1825_p3)
}
  0x21   : > { %s1874_s19 = smov 64   ;;  %s1875_s20 = smov 4  }
  0x22   : > { %1688 = dma.hbm_to_vmem [thread:$0]  (!%p1940_p5), %s2195_s4, 256, %s248_s11, [#allocation3], %s1874_s19, %s1874_s19, %s1875_s20  }
  0x23   : > { %s1840_s23 = scalar_lea.vmem %s1944_s14, 256  ;;  %p1848_p2 = scmp.lt.s32.totalorder %s1944_s14, %s1944_s14 }
  0x24   : > { %p1841_p9 = scmp.ne.s32.totalorder %s1944_s14, %s1840_s23  ;;  %p1849_p3 = scmp.lt.s32.totalorder %s1840_s23, %s1840_s23 }
  0x26   : > { %p1843_p10 = pnand %p1841_p9, %p1779_p6  ;;  %p1850_p12 = por %p1849_p3, %p1848_p2 }
  0x28   : > { %p1844_p11 = pneg %p1843_p10 }
  0x2a   : > { %p1851_p13 = pnand %p1850_p12, %p1844_p11 }
  0x2c   : > { %1854 = shalt.err (!%p1851_p13)
}
  0x2d   : > { %1694 = dma.hbm_to_vmem [thread:$0]  (!%p1940_p5), %s2197_s6, 256, %s1944_s14, [#allocation5], %s1874_s19, %s1874_s19, %s1875_s20  }
  0x2e   : > { %p2204_p0 = scmp.ne.s32.totalorder %s2202_s9, 0 }
  0x2f   : > { %p2205_p1 = scmp.eq.s32.totalorder (!%p2204_p0), %s1927_s30, 0 }
  0x30   : > { %306 = sbr.rel (%p2204_p0) target bundleno = 2197 (0x895), region = 52 }
  0x35   : > { %1860 = dma.done.wait (%p2205_p1), [#allocation3], 256   ;;  %p2206_p6 = pmov %p2205_p1 }
  0x36   : > { %p2207_p4 = pmov %p2205_p1 }
  0x37   : > { %1862 = vsyncadd (%p2206_p6), [#allocation3], 4294967040 }
  0x38   : > { %1864 = dma.done.wait (%p2207_p4), [#allocation5], 384   ;;  %p2208_p7 = pmov %p2205_p1 }
  0x39   : > { %p353_p8 = scmp.lt.s32.totalorder %s1927_s30, 1  ;;  %vm430_vm0 = vcmask 523264   ;;  %v1722_v8 = vld [vmem:[%s2193_s2] sm:$0xff]   ;;  %vm524_vm1 = vcmask 130048   ;;  %v514_v21 = vlaneseq  ;;  %v2022_v24 = vld [vmem:[#allocation4] sm:$0xff]  ;;  %vm610_vm2 = vcmask 261120  }
  0x3a   : > { %1866 = vsyncadd (%p2208_p7), [#allocation5], 4294966912  ;;  %1595 = vmatprep.subr.bf16.mxu1 %v1722_v8 }
  0x3b   : > { %s2210_s30 = smov (!%p353_p8, %s1927_s30), 1  ;;  %1596 = vmatpush3.bf16.msra.mxu1 %v1722_v8  ;;  %v2019_v22 = vshrl.u32 %v514_v21, 7 }
  0x3c   : > { %s1529_s26 = sshll.u32 %s2210_s30, 5  ;;  %s1531_s21 = sshll.u32 %s2210_s30, 6 }
  0x3d   : > { %s362_s9 = scalar_lea.vmem %s2192_s1, %s1529_s26  ;;  %s357_s12 = scalar_lea.vmem %s2191_s0, %s1529_s26  ;;  %v516_v23 = vsub.s32 0, %v2019_v22 }
  0x3e   : > { %v1714_v0 = vld [vmem:[%s362_s9 + $0x18] sm:$0xff]   ;;  %v1715_v1 = vld [vmem:[%s362_s9 + $0x10] sm:$0xff]   ;;  %v1716_v2 = vld [vmem:[%s362_s9 + $0x8] sm:$0xff]   ;;  %s367_s24 = scalar_lea.vmem %s2199_s8, %s1531_s21 }
  0x3f   : > { %1579 = vmatprep.subr.bf16.mxu0 %v1714_v0  ;;  %v1998_v3 = vld [vmem:[%s357_s12] sm:$0xff]   ;;  %v2002_v5 = vld [vmem:[%s357_s12 + $0x8] sm:$0xff]   ;;  %v2004_v6 = vld [vmem:[%s357_s12 + $0x10] sm:$0xff]   ;;  %v517_v25 = vrot.slane %v2022_v24, %v516_v23 }
  0x40   : > { %1580 = vmatpush3.bf16.msra.mxu0 %v1714_v0  ;;  %1587 = vmatprep.mubr.msk.bf16.mxu0 %vm430_vm0, %v1998_v3  ;;  %v1717_v4 = vld [vmem:[%s362_s9] sm:$0xff]   ;;  %v2010_v7 = vld [vmem:[%s357_s12 + $0x18] sm:$0xff]  }
  0x41   : > { %1581 = vmatprep.subr.bf16.mxu0 %v1715_v1 }
  0x44   : > { %1582 = vmatpush3.bf16.msra.mxu0 %v1715_v1 }
  0x45   : > { %1583 = vmatprep.subr.bf16.mxu0 %v1716_v2 }
  0x48   : > { %1584 = vmatpush3.bf16.msra.mxu0 %v1716_v2 }
  0x49   : > { %1585 = vmatprep.subr.bf16.mxu0 %v1717_v4 }
  0x4c   : > { %1586 = vmatpush3.bf16.msra.mxu0 %v1717_v4 }
  0x4f   : > { %1588 = vmatmul.mubr.msk.bf16.vlgmr.msra.gmra.mxu0 %vm430_vm0, %v2002_v5 }
  0x50   : > { %1591 = vmatprep.mubr.msk.bf16.mxu0 %vm430_vm0, %v2004_v6 }
  0x57   : > { %1592 = vmatmul.mubr.msk.bf16.gmra.mxu0 %vm430_vm0, %v2010_v7 }
  0x58   : > { %1625 = vmatprep.mubr.msk.bf16.mxu0 %vm430_vm0, %v1998_v3 }
 0x10f   : > { %v1589_v9 = vpop.f32.mrf.mxu0 }
 0x111   : > { %v477_v10 = vpop.f32.mrf.mxu0 }
 0x113   : > { %v1590_v11 = vpop.f32.mrf.mxu0 }
 0x114   : > { %v509_v14 = vpack.c.bf16 %v1590_v11, %v1589_v9 }
 0x115   : > { %v480_v12 = vpop.f32.mrf.mxu0 }
 0x116   : > { %v508_v13 = vpack.c.bf16 %v480_v12, %v477_v10 }
 0x117   : > { %v1593_v15 = vpop.f32.mrf.mxu0 }
 0x118   : > { %1597 = vmatprep.mubr.msk.bf16.mxu1 %vm524_vm1, %v508_v13 }
 0x119   : > { %v493_v16 = vpop.f32.mrf.mxu0  ;;  %1598 = vmatmul.mubr.msk.bf16.vlgmr.msra.gmra.mxu1 %vm524_vm1, %v509_v14 }
 0x11b   : > { %v1594_v17 = vpop.f32.mrf.mxu0 }
 0x11c   : > { %v511_v20 = vpack.c.bf16 %v1594_v17, %v1593_v15 }
 0x11d   : > { %v496_v18 = vpop.f32.mrf.mxu0 }
 0x11e   : > { %v510_v19 = vpack.c.bf16 %v496_v18, %v493_v16 }
 0x120   : > { %1601 = vmatprep.mubr.msk.bf16.mxu1 %vm524_vm1, %v510_v19 }
 0x121   : > { %1602 = vmatmul.mubr.msk.bf16.gmra.mxu1 %vm524_vm1, %v511_v20 }
 0x1d9   : > { %v1599_v26 = vpop.f32.mrf.mxu1 }
 0x1da   : > { %v580_v27 = vadd.f32 %v1599_v26, %v517_v25 }
 0x1db   : > { %v571_v28 = vpop.f32.mrf.mxu1 }
 0x1dc   : > { %v604_v29 = vmax.f32 %v580_v27, 0.0  ;;  %v572_v30 = vadd.f32 %v571_v28, %v517_v25 }
 0x1dd   : > { %v1600_v31 = vpop.f32.mrf.mxu1 }
 0x1de   : > { %v602_v32 = vmax.f32 %v572_v30, 0.0  ;;  %v583_v33 = vadd.f32 %v1600_v31, %v517_v25  ;;  %v617_v34 = vsel %vm610_vm2, %v604_v29, 0.0 }
 0x1df   : > { %618 = vadd.xlane.f32.xlu1 %v617_v34  ;;  %v574_v35 = vpop.f32.mrf.mxu1 }
 0x1e0   : > { %v605_v36 = vmax.f32 %v583_v33, 0.0  ;;  %v575_v37 = vadd.f32 %v574_v35, %v517_v25  ;;  %v611_v38 = vsel %vm610_vm2, %v602_v32, 0.0 }
 0x1e1   : > { %612 = vadd.xlane.f32.xlu0 %v611_v38  ;;  %v1603_v39 = vpop.f32.mrf.mxu1 }
 0x1e2   : > { %v603_v40 = vmax.f32 %v575_v37, 0.0  ;;  %v620_v41 = vsel %vm610_vm2, %v605_v36, 0.0  ;;  %v596_v43 = vadd.f32 %v1603_v39, %v517_v25 }
 0x1e3   : > { %621 = vadd.xlane.f32.xlu1 %v620_v41  ;;  %v587_v42 = vpop.f32.mrf.mxu1  ;;  %v1724_v41 = vld [vmem:[%s2194_s3] sm:$0xff]  }
 0x1e4   : > { %v588_v44 = vadd.f32 %v587_v42, %v517_v25  ;;  %v614_v45 = vsel %vm610_vm2, %v603_v40, 0.0  ;;  %v608_v49 = vmax.f32 %v596_v43, 0.0 }
 0x1e5   : > { %615 = vadd.xlane.f32.xlu0 %v614_v45  ;;  %v1604_v46 = vpop.f32.mrf.mxu1 }
 0x1e6   : > { %v606_v47 = vmax.f32 %v588_v44, 0.0  ;;  %v599_v50 = vadd.f32 %v1604_v46, %v517_v25  ;;  %v629_v56 = vsel %vm610_vm2, %v608_v49, 0.0 }
 0x1e7   : > { %v590_v48 = vpop.f32.mrf.mxu1 }
 0x1e8   : > { %v591_v51 = vadd.f32 %v590_v48, %v517_v25  ;;  %v623_v52 = vsel %vm610_vm2, %v606_v47, 0.0  ;;  %v609_v54 = vmax.f32 %v599_v50, 0.0 }
 0x1e9   : > { %624 = vadd.xlane.f32.xlu0 %v623_v52 }
 0x1ea   : > { %v607_v53 = vmax.f32 %v591_v51, 0.0  ;;  %v632_v57 = vsel %vm610_vm2, %v609_v54, 0.0 }
 0x1ec   : > { %v626_v55 = vsel %vm610_vm2, %v607_v53, 0.0 }
 0x1ed   : > { %627 = vadd.xlane.f32.xlu1 %v626_v55  ;;  %630 = vadd.xlane.f32.xlu0 %v629_v56 }
 0x1f1   : > { %633 = vadd.xlane.f32.xlu1 %v632_v57 }
 0x268   : > { %v619_v58 = vpop.xlane.xlu1 %618 }
 0x269   : > { %v638_v59 = vmul.f32 0.03125, %v619_v58 }
 0x26a   : > { %v613_v60 = vpop.xlane.xlu0 %612 }
 0x26b   : > { %v636_v61 = vmul.f32 0.03125, %v613_v60  ;;  %v2033_v63 = vsub.f32 %v604_v29, %v638_v59 }
 0x26c   : > { %v622_v62 = vpop.xlane.xlu1 %621 }
 0x26d   : > { %v2035_v0 = vsub.f32 %v602_v32, %v636_v61  ;;  %v639_v1 = vmul.f32 0.03125, %v622_v62  ;;  %v654_v12 = vmul.f32 %v2033_v63, %v2033_v63  ;;  %v718_v61 = vsub.s32 3, %v2019_v22 }
 0x26e   : > { %v616_v2 = vpop.xlane.xlu0 %615 }
 0x26f   : > { %v637_v4 = vmul.f32 0.03125, %v616_v2  ;;  %v652_v8 = vmul.f32 %v2035_v0, %v2035_v0  ;;  %v2039_v9 = vsub.f32 %v605_v36, %v639_v1  ;;  %v666_v18 = vsel %vm610_vm2, %v654_v12, 0.0 }
 0x271   : > { %v2041_v10 = vsub.f32 %v603_v40, %v637_v4  ;;  %v660_v11 = vsel %vm610_vm2, %v652_v8, 0.0  ;;  %v655_v19 = vmul.f32 %v2039_v9, %v2039_v9  ;;  %v1723_v40 = vld [vmem:[%s2194_s3 + $0x8] sm:$0xff]  }
 0x272   : > { %661 = vadd.xlane.f32.xlu0 %v660_v11  ;;  %v625_v13 = vpop.xlane.xlu0 %624  ;;  %1605 = vmatprep.subr.bf16.mxu1 %v1723_v40  ;;  %v719_v11 = vrot.slane %v2022_v24, %v718_v61 }
 0x273   : > { %v640_v14 = vmul.f32 0.03125, %v625_v13  ;;  %v653_v15 = vmul.f32 %v2041_v10, %v2041_v10  ;;  %v669_v29 = vsel %vm610_vm2, %v655_v19, 0.0  ;;  %1606 = vmatpush3.bf16.msra.mxu1 %v1723_v40 }
 0x274   : > { %1607 = vmatprep.subr.bf16.mxu1 %v1724_v41 }
 0x275   : > { %v2048_v16 = vsub.f32 %v606_v47, %v640_v14  ;;  %v663_v17 = vsel %vm610_vm2, %v653_v15, 0.0  ;;  %v730_v14 = vsub.s32 4, %v2019_v22 }
 0x276   : > { %664 = vadd.xlane.f32.xlu1 %v663_v17  ;;  %v628_v20 = vpop.xlane.xlu1 %627  ;;  %667 = vadd.xlane.f32.xlu0 %v666_v18  ;;  %v631_v21 = vpop.xlane.xlu0 %630 }
 0x277   : > { %v641_v23 = vmul.f32 0.03125, %v628_v20  ;;  %v642_v25 = vmul.f32 0.03125, %v631_v21  ;;  %v656_v26 = vmul.f32 %v2048_v16, %v2048_v16  ;;  %1608 = vmatpush3.bf16.msra.mxu1 %v1724_v41  ;;  %v731_v20 = vrot.slane %v2022_v24, %v730_v14 }
 0x279   : > { %v2056_v27 = vsub.f32 %v607_v53, %v641_v23  ;;  %v2058_v28 = vsub.f32 %v608_v49, %v642_v25  ;;  %v672_v30 = vsel %vm610_vm2, %v656_v26, 0.0 }
 0x27a   : > { %670 = vadd.xlane.f32.xlu1 %v669_v29  ;;  %v634_v31 = vpop.xlane.xlu1 %633  ;;  %673 = vadd.xlane.f32.xlu0 %v672_v30 }
 0x27b   : > { %v643_v32 = vmul.f32 0.03125, %v634_v31  ;;  %v657_v33 = vmul.f32 %v2056_v27, %v2056_v27  ;;  %v658_v34 = vmul.f32 %v2058_v28, %v2058_v28 }
 0x27d   : > { %v2066_v35 = vsub.f32 %v609_v54, %v643_v32  ;;  %v675_v36 = vsel %vm610_vm2, %v657_v33, 0.0  ;;  %v678_v37 = vsel %vm610_vm2, %v658_v34, 0.0 }
 0x27e   : > { %676 = vadd.xlane.f32.xlu1 %v675_v36  ;;  %679 = vadd.xlane.f32.xlu0 %v678_v37 }
 0x27f   : > { %v659_v38 = vmul.f32 %v2066_v35, %v2066_v35 }
 0x281   : > { %v681_v39 = vsel %vm610_vm2, %v659_v38, 0.0 }
 0x282   : > { %682 = vadd.xlane.f32.xlu1 %v681_v39 }
 0x2fb   : > { %v662_v42 = vpop.xlane.xlu0 %661 }
 0x2fc   : > { %v684_v43 = vmul.f32 0.03125, %v662_v42 }
 0x2fe   : > { %v692_v44 = vadd.f32 1e-05, %v684_v43 }
 0x2ff   : > { %v665_v45 = vpop.xlane.xlu1 %664  ;;  %v668_v46 = vpop.xlane.xlu0 %667 }
 0x300   : > { %1729 = vrsqrt.f32 %v692_v44  ;;  %v685_v47 = vmul.f32 0.03125, %v665_v45  ;;  %v686_v48 = vmul.f32 0.03125, %v668_v46 }
 0x302   : > { %v693_v49 = vadd.f32 1e-05, %v685_v47  ;;  %v694_v50 = vadd.f32 1e-05, %v686_v48 }
 0x303   : > { %v671_v51 = vpop.xlane.xlu1 %670  ;;  %v674_v52 = vpop.xlane.xlu0 %673 }
 0x304   : > { %1731 = vrsqrt.f32 %v693_v49  ;;  %v687_v53 = vmul.f32 0.03125, %v671_v51  ;;  %v688_v54 = vmul.f32 0.03125, %v674_v52 }
 0x305   : > { %1733 = vrsqrt.f32 %v694_v50 }
 0x306   : > { %v695_v55 = vadd.f32 1e-05, %v687_v53  ;;  %v696_v56 = vadd.f32 1e-05, %v688_v54 }
 0x307   : > { %v677_v57 = vpop.xlane.xlu1 %676  ;;  %v680_v58 = vpop.xlane.xlu0 %679 }
 0x308   : > { %1735 = vrsqrt.f32 %v695_v55  ;;  %v689_v59 = vmul.f32 0.03125, %v677_v57  ;;  %v690_v60 = vmul.f32 0.03125, %v680_v58 }
 0x309   : > { %1737 = vrsqrt.f32 %v696_v56 }
 0x30a   : > { %v697_v62 = vadd.f32 1e-05, %v689_v59  ;;  %v698_v1 = vadd.f32 1e-05, %v690_v60  ;;  %v843_v60 = vsub.s32 1, %v2019_v22 }
 0x30b   : > { %v683_v2 = vpop.xlane.xlu1 %682 }
 0x30c   : > { %1739 = vrsqrt.f32 %v697_v62  ;;  %v691_v4 = vmul.f32 0.03125, %v683_v2  ;;  %v844_v61 = vrot.slane %v2022_v24, %v843_v60 }
 0x30d   : > { %v1730_v8 = vpop.eup %1729  ;;  %1741 = vrsqrt.f32 %v698_v1 }
 0x30e   : > { %v699_v12 = vadd.f32 1e-05, %v691_v4  ;;  %v708_v13 = vmul.f32 %v1730_v8, %v2035_v0 }
 0x310   : > { %1743 = vrsqrt.f32 %v699_v12  ;;  %v720_v19 = vmul.f32 %v719_v11, %v708_v13 }
 0x311   : > { %v1732_v15 = vpop.eup %1731 }
 0x312   : > { %v1734_v17 = vpop.eup %1733  ;;  %v709_v18 = vmul.f32 %v1732_v15, %v2041_v10  ;;  %v732_v31 = vadd.f32 %v731_v20, %v720_v19 }
 0x313   : > { %v710_v21 = vmul.f32 %v1734_v17, %v2033_v63 }
 0x314   : > { %v721_v23 = vmul.f32 %v719_v11, %v709_v18 }
 0x315   : > { %v1736_v25 = vpop.eup %1735  ;;  %v722_v29 = vmul.f32 %v719_v11, %v710_v21 }
 0x316   : > { %v1738_v26 = vpop.eup %1737  ;;  %v711_v30 = vmul.f32 %v1736_v25, %v2039_v9  ;;  %v733_v0 = vadd.f32 %v731_v20, %v721_v23 }
 0x317   : > { %v712_v32 = vmul.f32 %v1738_v26, %v2048_v16  ;;  %v734_v10 = vadd.f32 %v731_v20, %v722_v29 }
 0x318   : > { %v723_v33 = vmul.f32 %v719_v11, %v711_v30  ;;  %v740_v34 = vpack.c.bf16 %v733_v0, %v732_v31 }
 0x319   : > { %v1740_v36 = vpop.eup %1739  ;;  %v724_v39 = vmul.f32 %v719_v11, %v712_v32 }
 0x31a   : > { %v1742_v37 = vpop.eup %1741  ;;  %1609 = vmatprep.mubr.msk.bf16.mxu1 %vm610_vm2, %v740_v34  ;;  %v735_v38 = vadd.f32 %v731_v20, %v723_v33  ;;  %v713_v63 = vmul.f32 %v1740_v36, %v2056_v27 }
 0x31b   : > { %v714_v40 = vmul.f32 %v1742_v37, %v2058_v28  ;;  %v736_v43 = vadd.f32 %v731_v20, %v724_v39 }
 0x31c   : > { %v741_v41 = vpack.c.bf16 %v735_v38, %v734_v10  ;;  %v725_v42 = vmul.f32 %v719_v11, %v713_v63 }
 0x31d   : > { %v1744_v9 = vpop.eup %1743  ;;  %v726_v45 = vmul.f32 %v719_v11, %v714_v40 }
 0x31e   : > { %1610 = vmatmul.mubr.msk.bf16.vlgmr.msra.gmra.mxu1 %vm610_vm2, %v741_v41  ;;  %v737_v16 = vadd.f32 %v731_v20, %v725_v42  ;;  %v715_v44 = vmul.f32 %v1744_v9, %v2066_v35 }
 0x31f   : > { %v738_v48 = vadd.f32 %v731_v20, %v726_v45 }
 0x320   : > { %v742_v46 = vpack.c.bf16 %v737_v16, %v736_v43  ;;  %v727_v47 = vmul.f32 %v719_v11, %v715_v44 }
 0x322   : > { %1613 = vmatprep.mubr.msk.bf16.mxu1 %vm610_vm2, %v742_v46  ;;  %v739_v49 = vadd.f32 %v731_v20, %v727_v47 }
 0x324   : > { %v743_v27 = vpack.c.bf16 %v739_v49, %v738_v48 }
 0x326   : > { %1614 = vmatmul.mubr.msk.bf16.gmra.mxu1 %vm610_vm2, %v743_v27 }
 0x3de   : > { %v1611_v28 = vpop.f32.mrf.mxu1 }
 0x3e0   : > { %v806_v50 = vpop.f32.mrf.mxu1 }
 0x3e2   : > { %v1612_v51 = vpop.f32.mrf.mxu1 }
 0x3e3   : > { %v838_v58 = vpack.c.bf16 %v1612_v51, %v1611_v28 }
 0x3e4   : > { %v809_v52 = vpop.f32.mrf.mxu1 }
 0x3e5   : > { %v837_v59 = vpack.c.bf16 %v809_v52, %v806_v50 }
 0x3e6   : > { %v1615_v53 = vpop.f32.mrf.mxu1 }
 0x3e8   : > { %v822_v54 = vpop.f32.mrf.mxu1 }
 0x3ea   : > { %v1616_v55 = vpop.f32.mrf.mxu1 }
 0x3eb   : > { %v840_v56 = vpack.c.bf16 %v1616_v55, %v1615_v53 }
 0x3ec   : > { %v825_v57 = vpop.f32.mrf.mxu1 }
 0x3ed   : > { %v839_v35 = vpack.c.bf16 %v825_v57, %v822_v54  ;;  %1617 = vmatprep.subr.bf16.mxu0 %v840_v56 }
 0x3ee   : > { %1618 = vmatpush3.bf16.msra.mxu0 %v840_v56 }
 0x3ef   : > { %1619 = vmatprep.subr.bf16.mxu0 %v839_v35 }
 0x3f2   : > { %1620 = vmatpush3.bf16.msra.mxu0 %v839_v35 }
 0x3f3   : > { %1621 = vmatprep.subr.bf16.mxu0 %v838_v58 }
 0x3f6   : > { %1622 = vmatpush3.bf16.msra.mxu0 %v838_v58 }
 0x3f7   : > { %1623 = vmatprep.subr.bf16.mxu0 %v837_v59 }
 0x3fa   : > { %1624 = vmatpush3.bf16.msra.mxu0 %v837_v59 }
 0x3fd   : > { %1626 = vmatmul.mubr.msk.bf16.vlgmr.msra.gmra.mxu0 %vm430_vm0, %v2002_v5 }
 0x3fe   : > { %1629 = vmatprep.mubr.msk.bf16.mxu0 %vm430_vm0, %v2004_v6 }
 0x405   : > { %1630 = vmatmul.mubr.msk.bf16.gmra.mxu0 %vm430_vm0, %v2010_v7 }
 0x406   : > { %1653 = vmatprep.mubr.msk.bf16.mxu0 %vm430_vm0, %v1998_v3 }
 0x4bd   : > { %v1627_v62 = vpop.f32.mrf.mxu0 }
 0x4be   : > { %v888_v2 = vadd.f32 %v1627_v62, %v844_v61 }
 0x4bf   : > { %v879_v1 = vpop.f32.mrf.mxu0 }
 0x4c0   : > { %v880_v4 = vadd.f32 %v879_v1, %v844_v61  ;;  %v912_v14 = vmax.f32 %v888_v2, 0.0 }
 0x4c1   : > { %v1628_v8 = vpop.f32.mrf.mxu0 }
 0x4c2   : > { %v910_v11 = vmax.f32 %v880_v4, 0.0  ;;  %v891_v12 = vadd.f32 %v1628_v8, %v844_v61  ;;  %v924_v26 = vsel %vm610_vm2, %v912_v14, 0.0 }
 0x4c3   : > { %v882_v13 = vpop.f32.mrf.mxu0 }
 0x4c4   : > { %v883_v15 = vadd.f32 %v882_v13, %v844_v61  ;;  %v918_v17 = vsel %vm610_vm2, %v910_v11, 0.0  ;;  %v913_v3 = vmax.f32 %v891_v12, 0.0 }
 0x4c5   : > { %v1631_v18 = vpop.f32.mrf.mxu0  ;;  %919 = vadd.xlane.f32.xlu0 %v918_v17 }
 0x4c6   : > { %v911_v19 = vmax.f32 %v883_v15, 0.0  ;;  %v904_v21 = vadd.f32 %v1631_v18, %v844_v61  ;;  %v927_v0 = vsel %vm610_vm2, %v913_v3, 0.0 }
 0x4c7   : > { %v895_v20 = vpop.f32.mrf.mxu0 }
 0x4c8   : > { %v896_v23 = vadd.f32 %v895_v20, %v844_v61  ;;  %v921_v25 = vsel %vm610_vm2, %v911_v19, 0.0  ;;  %v916_v32 = vmax.f32 %v904_v21, 0.0  ;;  %v1726_v20 = vld [vmem:[#allocation2] sm:$0xff]  }
 0x4c9   : > { %v1632_v29 = vpop.f32.mrf.mxu0  ;;  %922 = vadd.xlane.f32.xlu1 %v921_v25  ;;  %925 = vadd.xlane.f32.xlu0 %v924_v26 }
 0x4ca   : > { %v914_v30 = vmax.f32 %v896_v23, 0.0  ;;  %v907_v33 = vadd.f32 %v1632_v29, %v844_v61  ;;  %v936_v63 = vsel %vm610_vm2, %v916_v32, 0.0 }
 0x4cb   : > { %v898_v31 = vpop.f32.mrf.mxu0 }
 0x4cc   : > { %v899_v34 = vadd.f32 %v898_v31, %v844_v61  ;;  %v930_v36 = vsel %vm610_vm2, %v914_v30, 0.0  ;;  %v917_v10 = vmax.f32 %v907_v33, 0.0 }
 0x4cd   : > { %928 = vadd.xlane.f32.xlu1 %v927_v0  ;;  %931 = vadd.xlane.f32.xlu0 %v930_v36 }
 0x4ce   : > { %v915_v37 = vmax.f32 %v899_v34, 0.0  ;;  %v939_v39 = vsel %vm610_vm2, %v917_v10, 0.0 }
 0x4d0   : > { %v933_v38 = vsel %vm610_vm2, %v915_v37, 0.0 }
 0x4d1   : > { %934 = vadd.xlane.f32.xlu1 %v933_v38  ;;  %937 = vadd.xlane.f32.xlu0 %v936_v63 }
 0x4d5   : > { %940 = vadd.xlane.f32.xlu1 %v939_v39 }
 0x54e   : > { %v920_v40 = vpop.xlane.xlu0 %919 }
 0x54f   : > { %v942_v41 = vmul.f32 0.03125, %v920_v40 }
 0x551   : > { %v2113_v42 = vsub.f32 %v910_v11, %v942_v41 }
 0x552   : > { %v923_v9 = vpop.xlane.xlu1 %922  ;;  %v926_v43 = vpop.xlane.xlu0 %925 }
 0x553   : > { %v943_v16 = vmul.f32 0.03125, %v923_v9  ;;  %v944_v44 = vmul.f32 0.03125, %v926_v43  ;;  %v958_v45 = vmul.f32 %v2113_v42, %v2113_v42  ;;  %v1024_v9 = vsub.s32 5, %v2019_v22 }
 0x555   : > { %v2117_v46 = vsub.f32 %v911_v19, %v943_v16  ;;  %v2119_v47 = vsub.f32 %v912_v14, %v944_v44  ;;  %v966_v48 = vsel %vm610_vm2, %v958_v45, 0.0 }
 0x556   : > { %v929_v49 = vpop.xlane.xlu1 %928  ;;  %967 = vadd.xlane.f32.xlu0 %v966_v48  ;;  %v932_v27 = vpop.xlane.xlu0 %931 }
 0x557   : > { %v945_v28 = vmul.f32 0.03125, %v929_v49  ;;  %v946_v50 = vmul.f32 0.03125, %v932_v27  ;;  %v959_v51 = vmul.f32 %v2117_v46, %v2117_v46  ;;  %v960_v52 = vmul.f32 %v2119_v47, %v2119_v47 }
 0x558   : > { %v1025_v49 = vrot.slane %v2022_v24, %v1024_v9  ;;  %v1149_v9 = vsub.s32 2, %v2019_v22 }
 0x559   : > { %v2126_v53 = vsub.f32 %v913_v3, %v945_v28  ;;  %v2128_v54 = vsub.f32 %v914_v30, %v946_v50  ;;  %v969_v55 = vsel %vm610_vm2, %v959_v51, 0.0  ;;  %v972_v56 = vsel %vm610_vm2, %v960_v52, 0.0  ;;  %v1725_v3 = vld [vmem:[#allocation2 + $0x8] sm:$0xff]  }
 0x55a   : > { %970 = vadd.xlane.f32.xlu1 %v969_v55  ;;  %v935_v57 = vpop.xlane.xlu1 %934  ;;  %973 = vadd.xlane.f32.xlu0 %v972_v56  ;;  %v938_v35 = vpop.xlane.xlu0 %937  ;;  %v1036_v50 = vsub.s32 6, %v2019_v22 }
 0x55b   : > { %v947_v58 = vmul.f32 0.03125, %v935_v57  ;;  %v948_v59 = vmul.f32 0.03125, %v938_v35  ;;  %v961_v60 = vmul.f32 %v2126_v53, %v2126_v53  ;;  %v962_v61 = vmul.f32 %v2128_v54, %v2128_v54  ;;  %1633 = vmatprep.subr.bf16.mxu1 %v1725_v3 }
 0x55c   : > { %1634 = vmatpush3.bf16.msra.mxu1 %v1725_v3  ;;  %v1037_v57 = vrot.slane %v2022_v24, %v1036_v50 }
 0x55d   : > { %v2136_v62 = vsub.f32 %v915_v37, %v947_v58  ;;  %v2138_v1 = vsub.f32 %v916_v32, %v948_v59  ;;  %v975_v2 = vsel %vm610_vm2, %v961_v60, 0.0  ;;  %v978_v4 = vsel %vm610_vm2, %v962_v61, 0.0  ;;  %1635 = vmatprep.subr.bf16.mxu1 %v1726_v20 }
 0x55e   : > { %976 = vadd.xlane.f32.xlu1 %v975_v2  ;;  %v941_v8 = vpop.xlane.xlu1 %940  ;;  %979 = vadd.xlane.f32.xlu0 %v978_v4 }
 0x55f   : > { %v949_v11 = vmul.f32 0.03125, %v941_v8  ;;  %v963_v12 = vmul.f32 %v2136_v62, %v2136_v62  ;;  %v964_v13 = vmul.f32 %v2138_v1, %v2138_v1 }
 0x560   : > { %1636 = vmatpush3.bf16.msra.mxu1 %v1726_v20 }
 0x561   : > { %v2146_v14 = vsub.f32 %v917_v10, %v949_v11  ;;  %v981_v15 = vsel %vm610_vm2, %v963_v12, 0.0  ;;  %v984_v17 = vsel %vm610_vm2, %v964_v13, 0.0 }
 0x562   : > { %982 = vadd.xlane.f32.xlu1 %v981_v15  ;;  %985 = vadd.xlane.f32.xlu0 %v984_v17 }
 0x563   : > { %v965_v18 = vmul.f32 %v2146_v14, %v2146_v14 }
 0x565   : > { %v987_v19 = vsel %vm610_vm2, %v965_v18, 0.0 }
 0x566   : > { %988 = vadd.xlane.f32.xlu1 %v987_v19 }
 0x5df   : > { %v968_v21 = vpop.xlane.xlu0 %967 }
 0x5e0   : > { %v990_v23 = vmul.f32 0.03125, %v968_v21 }
 0x5e2   : > { %v998_v25 = vadd.f32 1e-05, %v990_v23 }
 0x5e3   : > { %v971_v26 = vpop.xlane.xlu1 %970  ;;  %v974_v29 = vpop.xlane.xlu0 %973 }
 0x5e4   : > { %1745 = vrsqrt.f32 %v998_v25  ;;  %v991_v30 = vmul.f32 0.03125, %v971_v26  ;;  %v992_v31 = vmul.f32 0.03125, %v974_v29 }
 0x5e6   : > { %v999_v0 = vadd.f32 1e-05, %v991_v30  ;;  %v1000_v32 = vadd.f32 1e-05, %v992_v31 }
 0x5e7   : > { %v977_v33 = vpop.xlane.xlu1 %976  ;;  %v980_v34 = vpop.xlane.xlu0 %979 }
 0x5e8   : > { %1747 = vrsqrt.f32 %v999_v0  ;;  %v993_v36 = vmul.f32 0.03125, %v977_v33  ;;  %v994_v37 = vmul.f32 0.03125, %v980_v34 }
 0x5e9   : > { %1749 = vrsqrt.f32 %v1000_v32 }
 0x5ea   : > { %v1001_v10 = vadd.f32 1e-05, %v993_v36  ;;  %v1002_v38 = vadd.f32 1e-05, %v994_v37 }
 0x5eb   : > { %v983_v63 = vpop.xlane.xlu1 %982  ;;  %v986_v39 = vpop.xlane.xlu0 %985 }
 0x5ec   : > { %1751 = vrsqrt.f32 %v1001_v10  ;;  %v995_v40 = vmul.f32 0.03125, %v983_v63  ;;  %v996_v41 = vmul.f32 0.03125, %v986_v39 }
 0x5ed   : > { %1753 = vrsqrt.f32 %v1002_v38 }
 0x5ee   : > { %v1003_v43 = vadd.f32 1e-05, %v995_v40  ;;  %v1004_v16 = vadd.f32 1e-05, %v996_v41  ;;  %v1728_v41 = vld [vmem:[#allocation6] sm:$0xff]  }
 0x5ef   : > { %v989_v44 = vpop.xlane.xlu1 %988 }
 0x5f0   : > { %1755 = vrsqrt.f32 %v1003_v43  ;;  %v997_v45 = vmul.f32 0.03125, %v989_v44 }
 0x5f1   : > { %v1746_v48 = vpop.eup %1745  ;;  %1757 = vrsqrt.f32 %v1004_v16  ;;  %v1150_v16 = vrot.slane %v2022_v24, %v1149_v9 }
 0x5f2   : > { %v1005_v27 = vadd.f32 1e-05, %v997_v45  ;;  %v1014_v28 = vmul.f32 %v1746_v48, %v2113_v42 }
 0x5f4   : > { %1759 = vrsqrt.f32 %v1005_v27  ;;  %v1026_v56 = vmul.f32 %v1025_v49, %v1014_v28 }
 0x5f5   : > { %v1748_v51 = vpop.eup %1747 }
 0x5f6   : > { %v1750_v52 = vpop.eup %1749  ;;  %v1015_v55 = vmul.f32 %v1748_v51, %v2117_v46  ;;  %v1038_v4 = vadd.f32 %v1037_v57, %v1026_v56 }
 0x5f7   : > { %v1016_v35 = vmul.f32 %v1750_v52, %v2119_v47 }
 0x5f8   : > { %v1027_v58 = vmul.f32 %v1025_v49, %v1015_v55 }
 0x5f9   : > { %v1752_v59 = vpop.eup %1751  ;;  %v1028_v61 = vmul.f32 %v1025_v49, %v1016_v35 }
 0x5fa   : > { %v1754_v60 = vpop.eup %1753  ;;  %v1017_v2 = vmul.f32 %v1752_v59, %v2126_v53  ;;  %v1039_v42 = vadd.f32 %v1037_v57, %v1027_v58 }
 0x5fb   : > { %v1018_v8 = vmul.f32 %v1754_v60, %v2128_v54  ;;  %v1040_v46 = vadd.f32 %v1037_v57, %v1028_v61 }
 0x5fc   : > { %v1029_v11 = vmul.f32 %v1025_v49, %v1017_v2  ;;  %v1046_v12 = vpack.c.bf16 %v1039_v42, %v1038_v4 }
 0x5fd   : > { %v1756_v13 = vpop.eup %1755  ;;  %v1030_v18 = vmul.f32 %v1025_v49, %v1018_v8 }
 0x5fe   : > { %v1758_v15 = vpop.eup %1757  ;;  %1637 = vmatprep.mubr.msk.bf16.mxu1 %vm610_vm2, %v1046_v12  ;;  %v1041_v17 = vadd.f32 %v1037_v57, %v1029_v11  ;;  %v1019_v47 = vmul.f32 %v1756_v13, %v2136_v62  ;;  %v1520_v12 = vld [vmem:[%s2198_s7] ss:$0 sm:$0xff] }
 0x5ff   : > { %v1020_v19 = vmul.f32 %v1758_v15, %v2138_v1  ;;  %v1042_v21 = vadd.f32 %v1037_v57, %v1030_v18  ;;  %v1727_v1 = vld [vmem:[#allocation6 + $0x8] sm:$0xff]  }
 0x600   : > { %v1047_v3 = vpack.c.bf16 %v1041_v17, %v1040_v46  ;;  %v1031_v20 = vmul.f32 %v1025_v49, %v1019_v47  ;;  %1661 = vmatprep.subr.bf16.mxu1 %v1727_v1 }
 0x601   : > { %v1760_v53 = vpop.eup %1759  ;;  %v1032_v25 = vmul.f32 %v1025_v49, %v1020_v19 }
 0x602   : > { %1638 = vmatmul.mubr.msk.bf16.vlgmr.msra.gmra.mxu1 %vm610_vm2, %v1047_v3  ;;  %v1043_v54 = vadd.f32 %v1037_v57, %v1031_v20  ;;  %v1021_v23 = vmul.f32 %v1760_v53, %v2146_v14 }
 0x603   : > { %v1044_v30 = vadd.f32 %v1037_v57, %v1032_v25  ;;  %1662 = vmatpush3.bf16.msra.mxu1 %v1727_v1 }
 0x604   : > { %v1048_v26 = vpack.c.bf16 %v1043_v54, %v1042_v21  ;;  %v1033_v29 = vmul.f32 %v1025_v49, %v1021_v23  ;;  %1663 = vmatprep.subr.bf16.mxu1 %v1728_v41 }
 0x606   : > { %1641 = vmatprep.mubr.msk.bf16.mxu1 %vm610_vm2, %v1048_v26  ;;  %v1045_v31 = vadd.f32 %v1037_v57, %v1033_v29 }
 0x607   : > { %1664 = vmatpush3.bf16.msra.mxu1 %v1728_v41 }
 0x608   : > { %v1049_v62 = vpack.c.bf16 %v1045_v31, %v1044_v30 }
 0x60a   : > { %1642 = vmatmul.mubr.msk.bf16.gmra.mxu1 %vm610_vm2, %v1049_v62 }
 0x6c2   : > { %v1639_v0 = vpop.f32.mrf.mxu1 }
 0x6c4   : > { %v1112_v32 = vpop.f32.mrf.mxu1 }
 0x6c6   : > { %v1640_v33 = vpop.f32.mrf.mxu1 }
 0x6c7   : > { %v1144_v39 = vpack.c.bf16 %v1640_v33, %v1639_v0 }
 0x6c8   : > { %v1115_v34 = vpop.f32.mrf.mxu1 }
 0x6c9   : > { %v1143_v40 = vpack.c.bf16 %v1115_v34, %v1112_v32 }
 0x6ca   : > { %v1643_v36 = vpop.f32.mrf.mxu1 }
 0x6cc   : > { %v1128_v37 = vpop.f32.mrf.mxu1 }
 0x6ce   : > { %v1644_v14 = vpop.f32.mrf.mxu1 }
 0x6cf   : > { %v1146_v10 = vpack.c.bf16 %v1644_v14, %v1643_v36 }
 0x6d0   : > { %v1131_v38 = vpop.f32.mrf.mxu1 }
 0x6d1   : > { %v1145_v63 = vpack.c.bf16 %v1131_v38, %v1128_v37  ;;  %1645 = vmatprep.subr.bf16.mxu0 %v1146_v10 }
 0x6d2   : > { %1646 = vmatpush3.bf16.msra.mxu0 %v1146_v10 }
 0x6d3   : > { %1647 = vmatprep.subr.bf16.mxu0 %v1145_v63 }
 0x6d6   : > { %1648 = vmatpush3.bf16.msra.mxu0 %v1145_v63 }
 0x6d7   : > { %1649 = vmatprep.subr.bf16.mxu0 %v1144_v39 }
 0x6da   : > { %1650 = vmatpush3.bf16.msra.mxu0 %v1144_v39 }
 0x6db   : > { %1651 = vmatprep.subr.bf16.mxu0 %v1143_v40 }
 0x6de   : > { %1652 = vmatpush3.bf16.msra.mxu0 %v1143_v40 }
 0x6e1   : > { %1654 = vmatmul.mubr.msk.bf16.vlgmr.msra.gmra.mxu0 %vm430_vm0, %v2002_v5 }
 0x6e2   : > { %1657 = vmatprep.mubr.msk.bf16.mxu0 %vm430_vm0, %v2004_v6 }
 0x6e9   : > { %1658 = vmatmul.mubr.msk.bf16.gmra.mxu0 %vm430_vm0, %v2010_v7 }
 0x7a1   : > { %v1655_v43 = vpop.f32.mrf.mxu0 }
 0x7a2   : > { %v1194_v27 = vadd.f32 %v1655_v43, %v1150_v16 }
 0x7a3   : > { %v1185_v44 = vpop.f32.mrf.mxu0 }
 0x7a4   : > { %v1186_v48 = vadd.f32 %v1185_v44, %v1150_v16  ;;  %v1218_v7 = vmax.f32 %v1194_v27, 0.0 }
 0x7a5   : > { %v1656_v45 = vpop.f32.mrf.mxu0 }
 0x7a6   : > { %v1197_v49 = vadd.f32 %v1656_v45, %v1150_v16  ;;  %v1216_v51 = vmax.f32 %v1186_v48, 0.0 }
 0x7a7   : > { %v1188_v5 = vpop.f32.mrf.mxu0 }
 0x7a8   : > { %v1189_v28 = vadd.f32 %v1188_v5, %v1150_v16  ;;  %v1219_v50 = vmax.f32 %v1197_v49, 0.0 }
 0x7a9   : > { %v1659_v6 = vpop.f32.mrf.mxu0 }
 0x7aa   : > { %v1217_v52 = vmax.f32 %v1189_v28, 0.0  ;;  %v1225_v57 = vpack.c.bf16 %v1219_v50, %v1218_v7  ;;  %v1210_v24 = vadd.f32 %v1659_v6, %v1150_v16 }
 0x7ab   : > { %v1201_v55 = vpop.f32.mrf.mxu0 }
 0x7ac   : > { %v1224_v56 = vpack.c.bf16 %v1217_v52, %v1216_v51  ;;  %v1202_v22 = vadd.f32 %v1201_v55, %v1150_v16  ;;  %v1222_v42 = vmax.f32 %v1210_v24, 0.0 }
 0x7ad   : > { %v1660_v35 = vpop.f32.mrf.mxu0 }
 0x7ae   : > { %v1213_v58 = vadd.f32 %v1660_v35, %v1150_v16  ;;  %1665 = vmatprep.mubr.msk.bf16.mxu1 %vm610_vm2, %v1224_v56  ;;  %v1220_v2 = vmax.f32 %v1202_v22, 0.0 }
 0x7af   : > { %v1204_v59 = vpop.f32.mrf.mxu0  ;;  %1666 = vmatmul.mubr.msk.bf16.vlgmr.msra.gmra.mxu1 %vm610_vm2, %v1225_v57 }
 0x7b0   : > { %v1205_v60 = vadd.f32 %v1204_v59, %v1150_v16  ;;  %v1223_v61 = vmax.f32 %v1213_v58, 0.0 }
 0x7b2   : > { %v1221_v4 = vmax.f32 %v1205_v60, 0.0  ;;  %v1227_v11 = vpack.c.bf16 %v1223_v61, %v1222_v42 }
 0x7b4   : > { %v1226_v8 = vpack.c.bf16 %v1221_v4, %v1220_v2 }
 0x7b6   : > { %1669 = vmatprep.mubr.msk.bf16.mxu1 %vm610_vm2, %v1226_v8 }
 0x7b7   : > { %1670 = vmatmul.mubr.msk.bf16.gmra.mxu1 %vm610_vm2, %v1227_v11 }
 0x86f   : > { %v1667_v13 = vpop.f32.mrf.mxu1 }
 0x870   : > { %v1306_v15 = vadd.f32 %v1667_v13, %v1520_v12 }
 0x871   : > { %v1297_v46 = vpop.f32.mrf.mxu1 }
 0x872   : > { %v1330_v17 = vmul.f32 0.5, %v1306_v15  ;;  %v1298_v47 = vadd.f32 %v1520_v12, %v1297_v46 }
 0x873   : > { %v1668_v18 = vpop.f32.mrf.mxu1 }
 0x874   : > { %1761 = vtanh.f32 %v1330_v17  ;;  %v1328_v19 = vmul.f32 0.5, %v1298_v47  ;;  %v1309_v3 = vadd.f32 %v1668_v18, %v1520_v12 }
 0x875   : > { %v1300_v20 = vpop.f32.mrf.mxu1 }
 0x876   : > { %1763 = vtanh.f32 %v1328_v19  ;;  %v1331_v53 = vmul.f32 0.5, %v1309_v3  ;;  %v1301_v21 = vadd.f32 %v1520_v12, %v1300_v20 }
 0x877   : > { %v1671_v54 = vpop.f32.mrf.mxu1 }
 0x878   : > { %1765 = vtanh.f32 %v1331_v53  ;;  %v1329_v23 = vmul.f32 0.5, %v1301_v21  ;;  %v1322_v25 = vadd.f32 %v1671_v54, %v1520_v12 }
 0x879   : > { %v1313_v26 = vpop.f32.mrf.mxu1 }
 0x87a   : > { %1767 = vtanh.f32 %v1329_v23  ;;  %v1334_v29 = vmul.f32 0.5, %v1322_v25  ;;  %v1314_v30 = vadd.f32 %v1520_v12, %v1313_v26 }
 0x87b   : > { %v1672_v31 = vpop.f32.mrf.mxu1 }
 0x87c   : > { %1769 = vtanh.f32 %v1334_v29  ;;  %v1332_v62 = vmul.f32 0.5, %v1314_v30  ;;  %v1325_v1 = vadd.f32 %v1672_v31, %v1520_v12 }
 0x87d   : > { %v1316_v0 = vpop.f32.mrf.mxu1 }
 0x87e   : > { %1771 = vtanh.f32 %v1332_v62  ;;  %v1335_v32 = vmul.f32 0.5, %v1325_v1  ;;  %v1317_v33 = vadd.f32 %v1520_v12, %v1316_v0 }
 0x880   : > { %1773 = vtanh.f32 %v1335_v32  ;;  %v1333_v34 = vmul.f32 0.5, %v1317_v33 }
 0x881   : > { %v1762_v36 = vpop.eup %1761 }
 0x882   : > { %v1346_v37 = vadd.f32 1.0, %v1762_v36  ;;  %1775 = vtanh.f32 %v1333_v34 }
 0x883   : > { %v1764_v14 = vpop.eup %1763 }
 0x884   : > { %v1354_v10 = vmul.f32 0.5, %v1346_v37  ;;  %v1344_v38 = vadd.f32 1.0, %v1764_v14 }
 0x885   : > { %v1766_v63 = vpop.eup %1765 }
 0x886   : > { %1362 = vst [vmem:[%s367_s24 + $0x10] sm:$0xff] %v1354_v10  ;;  %v1352_v39 = vmul.f32 0.5, %v1344_v38  ;;  %v1347_v40 = vadd.f32 1.0, %v1766_v63 }
 0x887   : > { %v1768_v41 = vpop.eup %1767 }
 0x888   : > { %1360 = vst [vmem:[%s367_s24] sm:$0xff] %v1352_v39  ;;  %v1355_v9 = vmul.f32 0.5, %v1347_v40  ;;  %v1345_v43 = vadd.f32 1.0, %v1768_v41 }
 0x889   : > { %v1770_v16 = vpop.eup %1769 }
 0x88a   : > { %1363 = vst [vmem:[%s367_s24 + $0x18] sm:$0xff] %v1355_v9  ;;  %v1353_v44 = vmul.f32 0.5, %v1345_v43  ;;  %v1350_v45 = vadd.f32 1.0, %v1770_v16 }
 0x88b   : > { %v1772_v48 = vpop.eup %1771 }
 0x88c   : > { %1361 = vst [vmem:[%s367_s24 + $0x8] sm:$0xff] %v1353_v44  ;;  %v1358_v49 = vmul.f32 0.5, %v1350_v45  ;;  %v1348_v27 = vadd.f32 1.0, %v1772_v48 }
 0x88d   : > { %v1774_v5 = vpop.eup %1773 }
 0x88e   : > { %1366 = vst [vmem:[%s367_s24 + $0x30] sm:$0xff] %v1358_v49  ;;  %v1356_v28 = vmul.f32 0.5, %v1348_v27  ;;  %v1351_v50 = vadd.f32 1.0, %v1774_v5 }
 0x88f   : > { %v1776_v6 = vpop.eup %1775 }
 0x890   : > { %1364 = vst [vmem:[%s367_s24 + $0x20] sm:$0xff] %v1356_v28  ;;  %v1359_v51 = vmul.f32 0.5, %v1351_v50  ;;  %v1349_v52 = vadd.f32 1.0, %v1776_v6 }
 0x892   : > { %1367 = vst [vmem:[%s367_s24 + $0x38] sm:$0xff] %v1359_v51  ;;  %v1357_v7 = vmul.f32 0.5, %v1349_v52 }
 0x894   : > { %1365 = vst [vmem:[%s367_s24 + $0x28] sm:$0xff] %v1357_v7 }
 0x895 PF: > { %s20_s27 = sadd.s32 1, %s1869_s27  }
 0x896   : > { %p17_p5 = scmp.ge.s32.totalorder %s20_s27, 4  }
 0x898   :  { %19 = sbr.rel (!%p17_p5) target bundleno = 2 (0x2), region = 98 }
 0x89d   :  { %1389 = vsyncpa [#allocation3], 1 }
 0x89e   :  { %1391 = vsyncpa [#allocation3 + $0x1], 1 }
 0x89f   :  { %1392 = vsyncpa [#allocation5], 1 }

</bundles_post_ra>
